<compile_context>
chip_gen: v6e
topology: v6e:2x2x1
jax: 0.10.0
libtpu: 0.0.40
codegen_flags: <defaults>
</compile_context>

<pallas_src>
import functools

import jax
import jax.numpy as jnp
from jax.experimental import pallas as pl
from jax.experimental.pallas import tpu as pltpu

BN_EPS = 1e-5


def _encoder_kernel(inv_r, n_pad_rows, x_ref, w1_ref, p_ref, w2_ref, o_ref):
    hid = w1_ref.shape[1]
    n_obj = w2_ref.shape[1]

    # --- conv1 as GEMM on 10x10 patches (MXU, bf16 operands, f32 accum) ---
    h = jnp.dot(x_ref[...], w1_ref[...],
                preferred_element_type=jnp.float32)            # [Rp, HID] f32

    # --- BatchNorm2d (training-mode) over the batch*spatial rows.
    # Padded rows are exactly zero (conv bias dropped -> cancelled by BN), so
    # they contribute nothing to the sum; their (0-mean)^2 contribution to the
    # centered sum is exactly n_pad_rows * mean^2, subtracted before dividing
    # by the true row count R (shifted two-pass variance: no cancellation).
    mean = jnp.sum(h, axis=0, keepdims=True) * inv_r           # [1, HID]
    hc = h - mean
    var = (jnp.sum(hc * hc, axis=0, keepdims=True)
           - n_pad_rows * (mean * mean)) * inv_r               # biased var
    scale = p_ref[0:1, :hid] * jax.lax.rsqrt(var + BN_EPS)     # gamma row
    act = jnp.maximum(hc * scale + p_ref[1:2, :hid], 0.0)      # + beta, ReLU

    # --- conv2 (1x1) as tiny GEMM (bf16 operands) + bias + sigmoid ---
    logits = jnp.dot(act.astype(jnp.bfloat16), w2_ref[...],
                     preferred_element_type=jnp.float32) + p_ref[2:3, :n_obj]
    o_ref[...] = jax.nn.sigmoid(logits)


def prepare_params(params):
    """One-time conversion of PyTorch-layout params to kernel-ready layout.

    Hoisted out of the per-call path.  conv1 bias (params['b1']) is
    intentionally dropped: training-mode BatchNorm cancels it exactly.
    """
    w1 = params["w1"]        # [HID, C, 10, 10]  (PyTorch conv layout)
    w2 = params["w2"]        # [O, HID, 1, 1]
    HID = w1.shape[0]
    K = w1.shape[1] * w1.shape[2] * w1.shape[3]
    Kp = ((K + 127) // 128) * 128               # lane-dense contraction dim
    O = w2.shape[0]
    PW = max(HID, O)

    w1_mat = w1.reshape(HID, K).T.astype(jnp.bfloat16)         # [K, HID]
    w1_mat = jnp.pad(w1_mat, ((0, Kp - K), (0, 0)))            # zero K-pad

    row = lambda v: jnp.pad(v.astype(jnp.float32), (0, PW - v.shape[0]))
    packed = jnp.stack([row(params["gamma"]), row(params["beta"]),
                        row(params["b2"])], axis=0)            # [3, PW] f32

    return {
        "w1_mat": w1_mat,                                      # [Kp, HID] bf16
        "packed_rows": packed,                                 # [3, PW]   f32
        "w2_mat": w2.reshape(O, HID).T.astype(jnp.bfloat16),   # [HID, O] bf16
    }


def _encoder_cnn_small(obs, prepared):
    """obs: NCHW float32 [B, C, H, W] with H % 10 == 0 and W % 10 == 0."""
    B, C, H, W = obs.shape
    Kp, HID = prepared["w1_mat"].shape
    O = prepared["w2_mat"].shape[1]
    HP, WP = H // 10, W // 10
    K = C * 100
    assert Kp >= K
    R = B * HP * WP
    Rp = ((R + 15) // 16) * 16           # bf16 LHS: pad rows to x16 sublanes

    # Patch extraction (allowed to fuse into the pallas_call operand):
    # non-overlapping 10x10 patches, K flatten order (C, kh, kw) matching the
    # PyTorch conv-weight flattening in prepare_params.  Zero row/K padding is
    # exact (no conv bias; zero contraction columns).
    patches = obs.astype(jnp.bfloat16).reshape(B, C, HP, 10, WP, 10)
    patches = patches.transpose(0, 2, 4, 1, 3, 5).reshape(R, K)
    patches = jnp.pad(patches, ((0, Rp - R), (0, Kp - K)))     # [Rp, Kp]

    full = lambda shape: pl.BlockSpec(shape, lambda i: (0,) * len(shape))

    flops = 2 * Rp * Kp * HID + 2 * Rp * HID * O
    bytes_accessed = (Rp * Kp * 2 + Kp * HID * 2 + HID * O * 2     # bf16
                      + prepared["packed_rows"].size * 4 + Rp * O * 4)

    out = pl.pallas_call(
        functools.partial(_encoder_kernel, 1.0 / R, float(Rp - R)),
        out_shape=jax.ShapeDtypeStruct((Rp, O), jnp.float32),
        grid=(1,),
        in_specs=[
            full((Rp, Kp)),
            full((Kp, HID)),
            full(prepared["packed_rows"].shape),
            full((HID, O)),
        ],
        out_specs=full((Rp, O)),
        compiler_params=pltpu.CompilerParams(
            dimension_semantics=("arbitrary",),
            # Let XLA fuse the patch-extraction producer into operand 0.
            allow_input_fusion=[True, False, False, False]),
        cost_estimate=pl.CostEstimate(
            flops=flops,
            transcendentals=Rp * O + HID,
            bytes_accessed=bytes_accessed),
    )(patches, prepared["w1_mat"], prepared["packed_rows"],
      prepared["w2_mat"])

    # Module semantics: NCHW [B, O, HP, WP]; fuses into one consumer in-jit.
    return out[:R].reshape(B, HP, WP, O).transpose(0, 3, 1, 2)


encoder_cnn_small = jax.jit(_encoder_cnn_small)


def init_params(key, input_dim, hidden_dim, num_objects):
    """Matches PyTorch default Conv2d/BatchNorm2d init for a fresh module."""
    k1, k2, k3, k4 = jax.random.split(key, 4)
    scale1 = 1.0 / jnp.sqrt(input_dim * 10 * 10)
    scale2 = 1.0 / jnp.sqrt(hidden_dim)
    return {
        "w1": jax.random.uniform(k1, (hidden_dim, input_dim, 10, 10),
                                 jnp.float32, -scale1, scale1),
        # b1 kept for module fidelity, but unused: training-mode BN cancels it.
        "b1": jax.random.uniform(k2, (hidden_dim,), jnp.float32,
                                 -scale1, scale1),
        "gamma": jnp.ones((hidden_dim,), jnp.float32),
        "beta": jnp.zeros((hidden_dim,), jnp.float32),
        "w2": jax.random.uniform(k3, (num_objects, hidden_dim, 1, 1),
                                 jnp.float32, -scale2, scale2),
        "b2": jax.random.uniform(k4, (num_objects,), jnp.float32,
                                 -scale2, scale2),
    }


if __name__ == "__main__":
    # Shapes consistent with ContrastiveSWM(encoder='small'): input_dim=3,
    # hidden_dim//16=32, num_objects=5, 50x50 obs -> 5x5 feature map.
    B, C, H, W = 2, 3, 50, 50
    HIDDEN, NUM_OBJ = 32, 5

    key = jax.random.PRNGKey(0)
    k_obs, k_par = jax.random.split(key)
    obs = jax.random.normal(k_obs, (B, C, H, W), jnp.float32)
    params = init_params(k_par, C, HIDDEN, NUM_OBJ)
    prepared = prepare_params(params)   # hoisted: done once, not per call

    out = encoder_cnn_small(obs, prepared)
    jax.block_until_ready(out)
    assert out.shape == (B, NUM_OBJ, H // 10, W // 10), out.shape
    print("KERNEL_OK")
</pallas_src>

<mosaic_0001>
module attributes {stable_mosaic.version = 11 : i64} {
  func.func @_encoder_kernel(%arg0: i32, %arg1: memref<64x384xbf16, #tpu.memory_space<vmem>>, %arg2: memref<384x32xbf16, #tpu.memory_space<vmem>>, %arg3: memref<3x32xf32, #tpu.memory_space<vmem>>, %arg4: memref<32x5xbf16, #tpu.memory_space<vmem>>, %arg5: memref<64x5xf32, #tpu.memory_space<vmem>>) attributes {dimension_semantics = [#tpu.dimension_semantics<arbitrary>], iteration_bounds = array<i64: 1>, scalar_prefetch = 0 : i64, scratch_operands = 0 : i64, tpu.core_type = #tpu.core_type<tc>, window_params = [{pipeline_mode = #tpu.pipeline_mode<synchronous>, transform_indices = @transform_0, window_bounds = array<i64: 64, 384>}, {pipeline_mode = #tpu.pipeline_mode<synchronous>, transform_indices = @transform_1, window_bounds = array<i64: 384, 32>}, {pipeline_mode = #tpu.pipeline_mode<synchronous>, transform_indices = @transform_2, window_bounds = array<i64: 3, 32>}, {pipeline_mode = #tpu.pipeline_mode<synchronous>, transform_indices = @transform_3, window_bounds = array<i64: 32, 5>}, {pipeline_mode = #tpu.pipeline_mode<synchronous>, transform_indices = @transform_4, window_bounds = array<i64: 64, 5>}]} {
    %c0 = arith.constant 0 : index
    %c0_0 = arith.constant 0 : index
    %0 = vector.load %arg1[%c0, %c0_0] : memref<64x384xbf16, #tpu.memory_space<vmem>>, vector<64x384xbf16>
    %c0_1 = arith.constant 0 : index
    %c0_2 = arith.constant 0 : index
    %1 = vector.load %arg2[%c0_1, %c0_2] : memref<384x32xbf16, #tpu.memory_space<vmem>>, vector<384x32xbf16>
    %cst = arith.constant dense<0.000000e+00> : vector<64x32xf32>
    %2 = tpu.matmul %0, %1, %cst {dimension_numbers = #tpu.dot_dimension_numbers<[1], [0], [0], [1], [0, 0, 1, 1], [], []>} : vector<64x384xbf16>, vector<384x32xbf16>, vector<64x32xf32> -> vector<64x32xf32>
    %cst_3 = arith.constant dense<0.000000e+00> : vector<32xf32>
    %3 = vector.multi_reduction <add>, %2, %cst_3 [0] : vector<64x32xf32> to vector<32xf32>
    %4 = vector.shape_cast %3 : vector<32xf32> to vector<1x32xf32>
    %cst_4 = arith.constant 2.000000e-02 : f32
    %5 = vector.broadcast %cst_4 : f32 to vector<1x32xf32>
    %6 = arith.mulf %4, %5 : vector<1x32xf32>
    %7 = vector.broadcast %6 : vector<1x32xf32> to vector<64x32xf32>
    %8 = arith.subf %2, %7 : vector<64x32xf32>
    %9 = arith.mulf %8, %8 : vector<64x32xf32>
    %cst_5 = arith.constant dense<0.000000e+00> : vector<32xf32>
    %10 = vector.multi_reduction <add>, %9, %cst_5 [0] : vector<64x32xf32> to vector<32xf32>
    %11 = vector.shape_cast %10 : vector<32xf32> to vector<1x32xf32>
    %12 = arith.mulf %6, %6 : vector<1x32xf32>
    %cst_6 = arith.constant 1.400000e+01 : f32
    %13 = vector.broadcast %cst_6 : f32 to vector<1x32xf32>
    %14 = arith.mulf %13, %12 : vector<1x32xf32>
    %15 = arith.subf %11, %14 : vector<1x32xf32>
    %cst_7 = arith.constant 2.000000e-02 : f32
    %16 = vector.broadcast %cst_7 : f32 to vector<1x32xf32>
    %17 = arith.mulf %15, %16 : vector<1x32xf32>
    %c0_8 = arith.constant 0 : index
    %c0_9 = arith.constant 0 : index
    %18 = vector.load %arg3[%c0_8, %c0_9] : memref<3x32xf32, #tpu.memory_space<vmem>>, vector<1x32xf32>
    %cst_10 = arith.constant 9.99999974E-6 : f32
    %19 = vector.broadcast %cst_10 : f32 to vector<1x32xf32>
    %20 = arith.addf %17, %19 : vector<1x32xf32>
    %21 = math.rsqrt %20 : vector<1x32xf32>
    %22 = arith.mulf %18, %21 : vector<1x32xf32>
    %23 = vector.broadcast %22 : vector<1x32xf32> to vector<64x32xf32>
    %24 = arith.mulf %8, %23 : vector<64x32xf32>
    %c1 = arith.constant 1 : index
    %c0_11 = arith.constant 0 : index
    %25 = vector.load %arg3[%c1, %c0_11] : memref<3x32xf32, #tpu.memory_space<vmem>>, vector<1x32xf32>
    %26 = vector.broadcast %25 : vector<1x32xf32> to vector<64x32xf32>
    %27 = arith.addf %24, %26 : vector<64x32xf32>
    %cst_12 = arith.constant 0.000000e+00 : f32
    %28 = vector.broadcast %cst_12 : f32 to vector<64x32xf32>
    %29 = arith.maximumf %27, %28 : vector<64x32xf32>
    %30 = arith.truncf %29 : vector<64x32xf32> to vector<64x32xbf16>
    %c0_13 = arith.constant 0 : index
    %c0_14 = arith.constant 0 : index
    %31 = vector.load %arg4[%c0_13, %c0_14] : memref<32x5xbf16, #tpu.memory_space<vmem>>, vector<32x5xbf16>
    %cst_15 = arith.constant dense<0.000000e+00> : vector<64x5xf32>
    %32 = tpu.matmul %30, %31, %cst_15 {dimension_numbers = #tpu.dot_dimension_numbers<[1], [0], [0], [1], [0, 0, 1, 1], [], []>} : vector<64x32xbf16>, vector<32x5xbf16>, vector<64x5xf32> -> vector<64x5xf32>
    %c2 = arith.constant 2 : index
    %c0_16 = arith.constant 0 : index
    %33 = vector.load %arg3[%c2, %c0_16] : memref<3x32xf32, #tpu.memory_space<vmem>>, vector<1x5xf32>
    %34 = vector.broadcast %33 : vector<1x5xf32> to vector<64x5xf32>
    %35 = arith.addf %32, %34 : vector<64x5xf32>
    %36 = arith.negf %35 : vector<64x5xf32>
    %37 = math.exp %36 : vector<64x5xf32>
    %cst_17 = arith.constant 1.000000e+00 : f32
    %38 = vector.broadcast %cst_17 : f32 to vector<64x5xf32>
    %39 = arith.addf %38, %37 : vector<64x5xf32>
    %40 = arith.divf %38, %39 : vector<64x5xf32>
    %c0_18 = arith.constant 0 : index
    %c0_19 = arith.constant 0 : index
    %41 = vector.load %arg5[%c0_18, %c0_19] : memref<64x5xf32, #tpu.memory_space<vmem>>, vector<64x5xf32>
    tpu.vector_store %arg5[%c0_18, %c0_19], %40 {strides = array<i32>} : memref<64x5xf32, #tpu.memory_space<vmem>>, vector<64x5xf32>,
    return
  }
  func.func @transform_0(%arg0: i32) -> (i32, i32) {
    %c0_i32 = arith.constant 0 : i32
    %c0_i32_0 = arith.constant 0 : i32
    %c0_i32_1 = arith.constant 0 : i32
    return %c0_i32, %c0_i32_0 : i32, i32
  }
  func.func @transform_1(%arg0: i32) -> (i32, i32) {
    %c0_i32 = arith.constant 0 : i32
    %c0_i32_0 = arith.constant 0 : i32
    %c0_i32_1 = arith.constant 0 : i32
    return %c0_i32, %c0_i32_0 : i32, i32
  }
  func.func @transform_2(%arg0: i32) -> (i32, i32) {
    %c0_i32 = arith.constant 0 : i32
    %c0_i32_0 = arith.constant 0 : i32
    %c0_i32_1 = arith.constant 0 : i32
    return %c0_i32, %c0_i32_0 : i32, i32
  }
  func.func @transform_3(%arg0: i32) -> (i32, i32) {
    %c0_i32 = arith.constant 0 : i32
    %c0_i32_0 = arith.constant 0 : i32
    %c0_i32_1 = arith.constant 0 : i32
    return %c0_i32, %c0_i32_0 : i32, i32
  }
  func.func @transform_4(%arg0: i32) -> (i32, i32) {
    %c0_i32 = arith.constant 0 : i32
    %c0_i32_0 = arith.constant 0 : i32
    %c0_i32_1 = arith.constant 0 : i32
    return %c0_i32, %c0_i32_0 : i32, i32
  }
}

</mosaic_0001>

<bundles_post_ra>
// kernel: _encoder_cnn_small.2
= control target key start
LH: loop header
LB: loop body
LE: loop exit
PB: predicated region body
PF: predicated region fallthrough
CT: control target
= control target key end

     0   :  { %s1739_s0 = inlined_call_operand.vmem [shape: bf16[384,32], index: 0, kind: input, shape index: {}]   ;;  %s1740_s1 = inlined_call_operand.vmem [shape: f32[3,32], index: 1, kind: input, shape index: {}]   ;;  %s1741_s2 = inlined_call_operand.vmem [shape: bf16[32,5], index: 2, kind: input, shape index: {}]   ;;  %s1742_s3 = inlined_call_operand.vmem [shape: bf16[50,300], index: 3, kind: input, shape index: {}]   ;;  %s1743_s4 = inlined_call_operand.<no memory space> [shape: bf16[], index: 4, kind: input, shape index: {}]   ;;  %s1744_s5 = inlined_call_operand.vmem [shape: f32[64,5], index: 5, kind: output, shape index: {}]  }
   0x1   :  { %v10_v0 = vstv %s1743_s4 }
   0x2   :  { %v1511_v1 = vunpack.i.l.bf16 %v10_v0 }
   0x3   :  { %v1405_v2 = vld [vmem:[%s1739_s0 + $0x78] sm:$0xff]   ;;  %v1408_v6 = vld [vmem:[%s1739_s0 + $0x70] sm:$0xff]   ;;  %v1411_v9 = vld [vmem:[%s1739_s0 + $0x68] sm:$0xff]   ;;  %v77_v16 = vlaneseq  ;;  %v1477_v54 = vmov 0.0   ;;  %vm937_vm2 = vcmask 261120   ;;  %vm1188_vm3 = vcmask 39936  }
   0x4   :  { %v1306_v3 = vpack.c.bf16 %v1511_v1, %v1511_v1  ;;  %v1406_v4 = vld [vmem:[%s1739_s0 + $0x38] sm:$0xff]   ;;  %1310 = vmatprep.subr.bf16.mxu0 %v1405_v2  ;;  %v1409_v7 = vld [vmem:[%s1739_s0 + $0x30] sm:$0xff]   ;;  %v1412_v10 = vld [vmem:[%s1739_s0 + $0x28] sm:$0xff]  }
   0x5   :  { %v1407_v5 = vld [vmem:[%s1739_s0 + $0xb8] sm:$0xff]   ;;  %1311 = vmatpush3.bf16.msra.mxu0 %v1406_v4  ;;  %v1410_v8 = vld [vmem:[%s1739_s0 + $0xb0] sm:$0xff]   ;;  %v1413_v11 = vld [vmem:[%s1739_s0 + $0xa8] sm:$0xff]   ;;  %v78_v20 = vand.u32 127, %v77_v16  ;;  %v1569_v23 = vshrl.u32 %v77_v16, 7 }
   0x6   :  { %1307 = vst [vmem:[#allocation7 + $0x58] sm:$0xff] %v1306_v3   ;;  %1368 = vmatprep.subr.bf16.mxu1 %v1407_v5  ;;  %1312 = vmatprep.subr.bf16.mxu0 %v1408_v6  ;;  %v1414_v12 = vld [vmem:[%s1739_s0 + $0x60] sm:$0xff]   ;;  %v1417_v15 = vld [vmem:[%s1739_s0 + $0x58] sm:$0xff]   ;;  %v1420_v19 = vld [vmem:[%s1739_s0 + $0x50] sm:$0xff]  }
   0x7   :  { %1369 = vmatpush3.bf16.msra.mxu1 %v1407_v5  ;;  %v1415_v13 = vld [vmem:[%s1739_s0 + $0x20] sm:$0xff]   ;;  %v1419_v17 = vld [vmem:[%s1739_s0 + $0x98] sm:$0xff]   ;;  %v1422_v21 = vld [vmem:[%s1739_s0 + $0x90] sm:$0xff]   ;;  %v1574_v25 = vadd.s32 256, %v78_v20  ;;  %v1586_v29 = vadd.s32 48, %v1569_v23 }
   0x8   :  { %1370 = vmatprep.subr.bf16.mxu1 %v1410_v8  ;;  %v1416_v14 = vld [vmem:[%s1739_s0 + $0xa0] sm:$0xff]   ;;  %v1418_v18 = vld [vmem:[%s1739_s0 + $0x18] sm:$0xff]   ;;  %v1421_v22 = vld [vmem:[%s1739_s0 + $0x10] sm:$0xff]  }
   0x9   :  { %1313 = vmatpush3.bf16.msra.mxu0 %v1409_v7  ;;  %v1423_v24 = vld [vmem:[%s1739_s0 + $0x48] sm:$0xff]   ;;  %v1426_v28 = vld [vmem:[%s1739_s0 + $0x40] sm:$0xff]   ;;  %vm80_vm0 = vcmp.lt.s32.totalorder %v1574_v25, 300  ;;  %v1204_v33 = vld [vmem:[%s1742_s3 + $0x10] sm:$0xf]  ;;  %vm451_vm1 = vcmp.lt.s32.totalorder %v1586_v29, 50 }
   0xa   :  { %1314 = vmatprep.subr.bf16.mxu0 %v1411_v9  ;;  %v1424_v26 = vld [vmem:[%s1739_s0 + $0x8] sm:$0xff]   ;;  %v1428_v30 = vld [vmem:[%s1739_s0 + $0x80] sm:$0xff]   ;;  %124 = vst [vmem:[#allocation7 + $0x10] sm:$0xf] %v1204_v33  ;;  %v1613_v43 = vld [vmem:[%s1742_s3 + $0x18] sm:$0xff]  }
   0xb   :  { %1371 = vmatpush3.bf16.msra.mxu1 %v1410_v8  ;;  %v1425_v27 = vld [vmem:[%s1739_s0 + $0x88] sm:$0xff]   ;;  %v23_v31 = vld [vmem:[%s1742_s3] sm:$0xff]   ;;  %v1624_v46 = vld [vmem:[%s1742_s3 + $0x30] sm:$0xff]  }
   0xc   :  { %1372 = vmatprep.subr.bf16.mxu1 %v1413_v11  ;;  %v1202_v32 = vld [vmem:[%s1742_s3 + $0x8] sm:$0xff]   ;;  %v1427_v34 = vld [vmem:[%s1739_s0] sm:$0xff]   ;;  %39 = vst [vmem:[#allocation7] sm:$0xff] %v23_v31   ;;  %v1214_v51 = vld [vmem:[%s1742_s3 + $0x38] sm:$0xff]  }
   0xd   :  { %1315 = vmatpush3.bf16.msra.mxu0 %v1412_v10  ;;  %v70_v35 = vunpack.c.l.bf16 %v1202_v32  ;;  %v1275_v36 = vunpack.c.h.bf16 %v1202_v32  ;;  %v1205_v37 = vld [vmem:[%s1742_s3 + $0x14] ss:$24 sps:$4 sm:$0xff]   ;;  %v1208_v38 = vld [vmem:[%s1742_s3 + $0x20] sm:$0xff]   ;;  %v1210_v44 = vld [vmem:[%s1742_s3 + $0x28] sm:$0xf]  ;;  %v334_v58 = vunpack.c.l.bf16 %v1214_v51  ;;  %v1295_v60 = vunpack.c.h.bf16 %v1214_v51 }
   0xe   :  { %1316 = vmatprep.subr.bf16.mxu0 %v1414_v12  ;;  %v136_v39 = vunpack.c.l.bf16 %v1205_v37  ;;  %v202_v40 = vunpack.c.l.bf16 %v1208_v38  ;;  %v1285_v41 = vunpack.c.h.bf16 %v1208_v38  ;;  %v268_v42 = vunpack.c.h.bf16 %v1205_v37  ;;  %256 = vst [vmem:[#allocation7 + $0x28] sm:$0xf] %v1210_v44  ;;  %v1216_v52 = vld [vmem:[%s1742_s3 + $0x40] sm:$0xf]  ;;  %v1217_v53 = vld [vmem:[%s1742_s3 + $0x44] sm:$0xff]   ;;  %v1220_v59 = vld [vmem:[%s1742_s3 + $0x4c] sm:$0xff]  }
   0xf   :  { %1373 = vmatpush3.bf16.msra.mxu1 %v1413_v11  ;;  %v81_v45 = vsel %vm80_vm0, %v70_v35, %v1511_v1  ;;  %406 = vst [vmem:[#allocation7 + $0x40] sm:$0xf] %v1216_v52  ;;  %v418_v61 = vunpack.c.l.bf16 %v1217_v53  ;;  %v502_v62 = vunpack.c.h.bf16 %v1220_v59  ;;  %v446_v63 = vunpack.c.h.bf16 %v1217_v53 }
  0x10   :  { %1374 = vmatprep.subr.bf16.mxu1 %v1416_v14  ;;  %v1276_v47 = vpack.c.bf16 %v1275_v36, %v81_v45  ;;  %v147_v48 = vsel %vm80_vm0, %v136_v39, %v1511_v1  ;;  %v213_v49 = vsel %vm80_vm0, %v202_v40, %v1511_v1  ;;  %v279_v50 = vsel %vm80_vm0, %v268_v42, %v1511_v1 }
  0x11   :  { %1317 = vmatpush3.bf16.msra.mxu0 %v1415_v13  ;;  %v149_v55 = vpack.c.bf16 %v1477_v54, %v147_v48  ;;  %v1286_v56 = vpack.c.bf16 %v1285_v41, %v213_v49  ;;  %v281_v57 = vpack.c.bf16 %v1477_v54, %v279_v50  ;;  %v345_v0 = vsel %vm80_vm0, %v334_v58, %v1511_v1 }
  0x12   :  { %1318 = vmatprep.subr.bf16.mxu0 %v1417_v15  ;;  %1277 = vst [vmem:[#allocation7 + $0x8] sm:$0xff] %v1276_v47   ;;  %v474_v2 = vunpack.c.l.bf16 %v1220_v59  ;;  %v1296_v3 = vpack.c.bf16 %v1295_v60, %v345_v0  ;;  %v429_v4 = vsel %vm80_vm0, %v418_v61, %v1511_v1  ;;  %v508_v5 = vsel %vm451_vm1, %v502_v62, %v1511_v1 }
  0x13   :  { %1375 = vmatpush3.bf16.msra.mxu1 %v1416_v14  ;;  %152 = vst [vmem:[#allocation7 + $0x14] sm:$0xf] %v149_v55  ;;  %1287 = vst [vmem:[#allocation7 + $0x20] sm:$0xff] %v1286_v56   ;;  %v452_v6 = vsel %vm451_vm1, %v446_v63, %v1511_v1  ;;  %v431_v7 = vpack.c.bf16 %v1477_v54, %v429_v4  ;;  %v513_v8 = vsel %vm80_vm0, %v508_v5, %v1511_v1  ;;  %v1431_v14 = vld [vmem:[#allocation7 + $0x4] ss:$12 sps:$4 sm:$0xff]  }
  0x14   :  { %1376 = vmatprep.subr.bf16.mxu1 %v1419_v17  ;;  %284 = vst [vmem:[#allocation7 + $0x2c] sm:$0xf] %v281_v57  ;;  %v459_v9 = vpack.c.bf16 %v1477_v54, %v452_v6  ;;  %v480_v10 = vsel %vm451_vm1, %v474_v2, %v1511_v1  ;;  %1297 = vst [vmem:[#allocation7 + $0x38] sm:$0xff] %v1296_v3   ;;  %v1301_v11 = vpack.c.bf16 %v1511_v1, %v513_v8 }
  0x15   :  { %1319 = vmatpush3.bf16.msra.mxu0 %v1418_v18  ;;  %v487_v12 = vpack.c.bf16 %v1477_v54, %v480_v10  ;;  %434 = vst [vmem:[#allocation7 + $0x44] sm:$0xf] %v431_v7  ;;  %839 = vmatprep.mubr.bf16.mxu0 %v1431_v14 }
  0x16   :  { %1320 = vmatprep.subr.bf16.mxu0 %v1420_v19  ;;  %462 = vst [vmem:[#allocation7 + $0x48] sm:$0xf] %v459_v9  ;;  %1302 = vst [vmem:[#allocation7 + $0x50] sm:$0xff] %v1301_v11  }
  0x17   :  { %1377 = vmatpush3.bf16.msra.mxu1 %v1419_v17  ;;  %490 = vst [vmem:[#allocation7 + $0x4c] sm:$0xf] %v487_v12 }
  0x18   :  { %1378 = vmatprep.subr.bf16.mxu1 %v1422_v21 }
  0x19   :  { %1321 = vmatpush3.bf16.msra.mxu0 %v1421_v22  ;;  %v1429_v13 = vld [vmem:[#allocation7] ss:$12 sps:$4 sm:$0xff]  }
  0x1a   :  { %1322 = vmatprep.subr.bf16.mxu0 %v1423_v24  ;;  %v1432_v15 = vld [vmem:[#allocation7 + $0x8] ss:$12 sps:$4 sm:$0xff]  }
  0x1b   :  { %1379 = vmatpush3.bf16.msra.mxu1 %v1422_v21  ;;  %v1433_v16 = vld [vmem:[#allocation7 + $0x20] ss:$12 sps:$4 sm:$0xff]   ;;  %1384 = vmatprep.mubr.bf16.mxu1 %v1432_v15  ;;  %v541_v17 = vld [vmem:[#allocation7 + $0x24] sm:$0xff] }
  0x1c   :  { %1380 = vmatprep.subr.bf16.mxu1 %v1425_v27  ;;  %v1225_v18 = vcombine.high %v1613_v43, %v541_v17  ;;  %v545_v19 = vld [vmem:[#allocation7 + $0x3c] sm:$0xff]  ;;  %v1436_v20 = vld [vmem:[#allocation7 + $0x38] ss:$12 sps:$4 sm:$0xff]   ;;  %v1224_v1 = vcombine.low %v1613_v43, %v541_v17 }
  0x1d   :  { %1323 = vmatpush3.bf16.msra.mxu0 %v1424_v26  ;;  %v1228_v21 = vcombine.high %v1624_v46, %v545_v19  ;;  %v1437_v22 = vld [vmem:[#allocation7 + $0x50] ss:$12 sps:$4 sm:$0xff]   ;;  %v1227_v24 = vcombine.low %v1624_v46, %v545_v19  ;;  %v1440_v26 = vld [vmem:[#allocation7 + $0x48] ss:$12 sps:$4 sm:$0xff]  }
  0x1e   :  { %1324 = vmatprep.subr.bf16.mxu0 %v1426_v28  ;;  %v1438_v25 = vld [vmem:[#allocation7 + $0x4c] ss:$12 sps:$4 sm:$0xff]   ;;  %v1442_v28 = vld [vmem:[%s1741_s2] sm:$0xff]  }
  0x1f   :  { %1381 = vmatpush3.bf16.msra.mxu1 %v1425_v27  ;;  %v1441_v27 = vld [vmem:[%s1741_s2 + $0x8] sm:$0xff]  }
  0x20   :  { %1382 = vmatprep.subr.bf16.mxu1 %v1428_v30 }
  0x21   :  { %1325 = vmatpush3.bf16.msra.mxu0 %v1427_v34 }
  0x23   :  { %1383 = vmatpush3.bf16.msra.mxu1 %v1428_v30 }
  0x24   :  { %840 = vmatmul.mubr.bf16.vlgmr.msra.gmra.mxu0 %v1429_v13  ;;  %1392 = vmatprep.subr.bf16.mxu1 %v1441_v27 }
  0x25   :  { %847 = vmatprep.mubr.bf16.mxu0 %v1225_v18 }
  0x26   :  { %1385 = vmatmul.mubr.bf16.vlgmr.msra.gmra.mxu1 %v1433_v16 }
  0x27   :  { %1388 = vmatprep.mubr.bf16.mxu1 %v1436_v20  ;;  %1393 = vmatpush3.bf16.msra.mxu1 %v1441_v27 }
  0x28   :  { %1394 = vmatprep.subr.bf16.mxu1 %v1442_v28 }
  0x2b   :  { %1395 = vmatpush3.bf16.msra.mxu1 %v1442_v28 }
  0x2c   :  { %848 = vmatmul.mubr.bf16.gmra.mxu0 %v1224_v1 }
  0x2d   :  { %855 = vmatprep.mubr.bf16.mxu0 %v1228_v21 }
  0x2e   :  { %1389 = vmatmul.mubr.bf16.gmra.mxu1 %v1437_v22 }
  0x34   :  { %856 = vmatmul.mubr.bf16.gmra.mxu0 %v1227_v24 }
  0x35   :  { %863 = vmatprep.mubr.bf16.mxu0 %v1438_v25 }
  0x3c   :  { %864 = vmatmul.mubr.bf16.gmra.mxu0 %v1440_v26 }
  0xe4   :  { %v1326_v29 = vpop.f32.mrf.mxu0 }
  0xe6   :  { %v1386_v30 = vpop.f32.mrf.mxu1  ;;  %v1327_v31 = vpop.f32.mrf.mxu0 }
  0xe7   :  { %v1328_v43 = vadd.f32 %v1327_v31, %v1326_v29 }
  0xe8   :  { %v906_v32 = vpop.f32.mrf.mxu1  ;;  %v1329_v33 = vpop.f32.mrf.mxu0 }
  0xe9   :  { %v907_v50 = vadd.f32 %v1328_v43, %v906_v32 }
  0xea   :  { %v1330_v34 = vpop.f32.mrf.mxu0  ;;  %v1387_v35 = vpop.f32.mrf.mxu1 }
  0xeb   :  { %v1331_v41 = vadd.f32 %v1330_v34, %v1329_v33  ;;  %v938_v58 = vsel %vm937_vm2, %v907_v50, 0.0 }
  0xec   :  { %v1332_v36 = vpop.f32.mrf.mxu0  ;;  %v909_v37 = vpop.f32.mrf.mxu1 }
  0xed   :  { %v910_v47 = vadd.f32 %v1331_v41, %v909_v37 }
  0xee   :  { %v1333_v38 = vpop.f32.mrf.mxu0  ;;  %v1390_v40 = vpop.f32.mrf.mxu1 }
  0xef   :  { %v1334_v44 = vadd.f32 %v1333_v38, %v1332_v36  ;;  %v939_v55 = vsel %vm937_vm2, %v910_v47, 0.0 }
  0xf0   :  { %v1335_v39 = vpop.f32.mrf.mxu0  ;;  %v922_v46 = vpop.f32.mrf.mxu1  ;;  %v940_v62 = vadd.f32 %v939_v55, %v938_v58 }
  0xf1   :  { %v915_v51 = vadd.f32 %v1386_v30, %v1334_v44 }
  0xf2   :  { %v1336_v42 = vpop.f32.mrf.mxu0  ;;  %v1391_v54 = vpop.f32.mrf.mxu1 }
  0xf3   :  { %v1337_v48 = vadd.f32 %v1336_v42, %v1335_v39  ;;  %v941_v59 = vsel %vm937_vm2, %v915_v51, 0.0 }
  0xf4   :  { %v1338_v45 = vpop.f32.mrf.mxu0  ;;  %v925_v63 = vpop.f32.mrf.mxu1  ;;  %v942_v4 = vadd.f32 %v941_v59, %v940_v62 }
  0xf5   :  { %v918_v56 = vadd.f32 %v1387_v35, %v1337_v48 }
  0xf6   :  { %v1339_v49 = vpop.f32.mrf.mxu0 }
  0xf7   :  { %v1340_v52 = vadd.f32 %v1339_v49, %v1338_v45  ;;  %v943_v2 = vsel %vm937_vm2, %v918_v56, 0.0 }
  0xf8   :  { %v1341_v53 = vpop.f32.mrf.mxu0  ;;  %v944_v8 = vadd.f32 %v943_v2, %v942_v4 }
  0xf9   :  { %v923_v60 = vadd.f32 %v1340_v52, %v922_v46 }
  0xfa   :  { %v1342_v57 = vpop.f32.mrf.mxu0 }
  0xfb   :  { %v1343_v61 = vadd.f32 %v1342_v57, %v1341_v53  ;;  %v945_v6 = vsel %vm937_vm2, %v923_v60, 0.0 }
  0xfc   :  { %v1344_v0 = vpop.f32.mrf.mxu0  ;;  %v946_v12 = vadd.f32 %v945_v6, %v944_v8  ;;  %v1007_v8 = vsub.s32 0, %v1569_v23 }
  0xfd   :  { %v926_v3 = vadd.f32 %v1343_v61, %v925_v63 }
  0xfe   :  { %v1345_v5 = vpop.f32.mrf.mxu0 }
  0xff   :  { %v1346_v7 = vadd.f32 %v1345_v5, %v1344_v0  ;;  %v947_v10 = vsel %vm937_vm2, %v926_v3, 0.0 }
 0x100   :  { %v1347_v9 = vpop.f32.mrf.mxu0  ;;  %v948_v16 = vadd.f32 %v947_v10, %v946_v12  ;;  %v1257_v12 = vld [vmem:[%s1740_s1 + $0x1] ss:$0 sm:$0xff] }
 0x101   :  { %v931_v11 = vadd.f32 %v1390_v40, %v1346_v7  ;;  %v1001_v7 = vld [vmem:[%s1740_s1] sm:$0x1] }
 0x102   :  { %v1348_v13 = vpop.f32.mrf.mxu0 }
 0x103   :  { %v949_v14 = vsel %vm937_vm2, %v931_v11, 0.0  ;;  %v1349_v15 = vadd.f32 %v1348_v13, %v1347_v9 }
 0x104   :  { %v950_v18 = vadd.f32 %v949_v14, %v948_v16 }
 0x105   :  { %v934_v17 = vadd.f32 %v1391_v54, %v1349_v15 }
 0x107   :  { %v951_v19 = vsel %vm937_vm2, %v934_v17, 0.0 }
 0x108   :  { %v952_v20 = vadd.f32 %v951_v19, %v950_v18 }
 0x10a   :  { %v953_v1 = vrot.slane %v952_v20, 4 }
 0x10c   :  { %v954_v21 = vadd.f32 %v953_v1, %v952_v20 }
 0x10e   :  { %v955_v22 = vrot.slane %v954_v21, 2 }
 0x110   :  { %v956_v24 = vadd.f32 %v955_v22, %v954_v21 }
 0x112   :  { %v957_v25 = vrot.slane %v956_v24, 1 }
 0x114   :  { %v958_v26 = vadd.f32 %v957_v25, %v956_v24 }
 0x116   :  { %v959_v27 = vmul.f32 0.02, %v958_v26 }
 0x118   :  { %v960_v28 = vsub.f32 %v907_v50, %v959_v27  ;;  %v961_v29 = vsub.f32 %v910_v47, %v959_v27  ;;  %v962_v30 = vsub.f32 %v915_v51, %v959_v27  ;;  %v963_v31 = vsub.f32 %v918_v56, %v959_v27 }
 0x119   :  { %v964_v32 = vsub.f32 %v923_v60, %v959_v27  ;;  %v965_v36 = vsub.f32 %v926_v3, %v959_v27  ;;  %v966_v41 = vsub.f32 %v931_v11, %v959_v27  ;;  %v967_v45 = vsub.f32 %v934_v17, %v959_v27 }
 0x11a   :  { %v968_v33 = vmul.f32 %v960_v28, %v960_v28  ;;  %v969_v34 = vmul.f32 %v961_v29, %v961_v29  ;;  %v970_v35 = vmul.f32 %v962_v30, %v962_v30  ;;  %v971_v37 = vmul.f32 %v963_v31, %v963_v31 }
 0x11b   :  { %v972_v42 = vmul.f32 %v964_v32, %v964_v32  ;;  %v973_v46 = vmul.f32 %v965_v36, %v965_v36  ;;  %v974_v49 = vmul.f32 %v966_v41, %v966_v41  ;;  %v975_v52 = vmul.f32 %v967_v45, %v967_v45 }
 0x11c   :  { %v976_v38 = vsel %vm937_vm2, %v968_v33, 0.0  ;;  %v977_v39 = vsel %vm937_vm2, %v969_v34, 0.0  ;;  %v979_v43 = vsel %vm937_vm2, %v970_v35, 0.0  ;;  %v981_v47 = vsel %vm937_vm2, %v971_v37, 0.0 }
 0x11d   :  { %v978_v40 = vadd.f32 %v977_v39, %v976_v38  ;;  %v983_v50 = vsel %vm937_vm2, %v972_v42, 0.0  ;;  %v985_v53 = vsel %vm937_vm2, %v973_v46, 0.0  ;;  %v987_v55 = vsel %vm937_vm2, %v974_v49, 0.0 }
 0x11e   :  { %v989_v57 = vsel %vm937_vm2, %v975_v52, 0.0  ;;  %v997_v63 = vmul.f32 %v959_v27, %v959_v27 }
 0x11f   :  { %v980_v44 = vadd.f32 %v979_v43, %v978_v40  ;;  %v1258_v40 = vld [vmem:[%s1740_s1 + $0x2] ss:$0 sm:$0xff] }
 0x120   :  { %v998_v3 = vmul.f32 14.0, %v997_v63 }
 0x121   :  { %v982_v48 = vadd.f32 %v981_v47, %v980_v44 }
 0x123   :  { %v984_v51 = vadd.f32 %v983_v50, %v982_v48 }
 0x125   :  { %v986_v54 = vadd.f32 %v985_v53, %v984_v51 }
 0x127   :  { %v988_v56 = vadd.f32 %v987_v55, %v986_v54 }
 0x129   :  { %v990_v58 = vadd.f32 %v989_v57, %v988_v56 }
 0x12b   :  { %v991_v59 = vrot.slane %v990_v58, 4 }
 0x12d   :  { %v992_v60 = vadd.f32 %v991_v59, %v990_v58 }
 0x12f   :  { %v993_v61 = vrot.slane %v992_v60, 2 }
 0x131   :  { %v994_v62 = vadd.f32 %v993_v61, %v992_v60 }
 0x133   :  { %v995_v0 = vrot.slane %v994_v62, 1 }
 0x135   :  { %v996_v2 = vadd.f32 %v995_v0, %v994_v62 }
 0x137   :  { %v999_v4 = vsub.f32 %v996_v2, %v998_v3 }
 0x139   :  { %v1000_v5 = vmul.f32 0.02, %v999_v4 }
 0x13b   :  { %v1002_v6 = vadd.f32 1e-05, %v1000_v5 }
 0x13d   :  { %1443 = vrsqrt.f32 %v1002_v6 }
 0x14a   :  { %v1444_v9 = vpop.eup %1443 }
 0x14b   :  { %v1004_v10 = vmul.f32 %v1444_v9, %v1001_v7 }
 0x14d   :  { %v1008_v11 = vrot.slane %v1004_v10, %v1007_v8 }
 0x14f   :  { %v1009_v13 = vmul.f32 %v1008_v11, %v960_v28  ;;  %v1010_v14 = vmul.f32 %v1008_v11, %v961_v29  ;;  %v1011_v15 = vmul.f32 %v1008_v11, %v962_v30  ;;  %v1012_v16 = vmul.f32 %v1008_v11, %v963_v31 }
 0x150   :  { %v1013_v17 = vmul.f32 %v1008_v11, %v964_v32  ;;  %v1014_v18 = vmul.f32 %v1008_v11, %v965_v36  ;;  %v1016_v19 = vmul.f32 %v1008_v11, %v967_v45  ;;  %v1015_v25 = vmul.f32 %v1008_v11, %v966_v41 }
 0x151   :  { %v1022_v20 = vadd.f32 %v1257_v12, %v1009_v13  ;;  %v1023_v1 = vadd.f32 %v1257_v12, %v1010_v14  ;;  %v1024_v21 = vadd.f32 %v1257_v12, %v1011_v15  ;;  %v1025_v22 = vadd.f32 %v1257_v12, %v1012_v16 }
 0x152   :  { %v1026_v24 = vadd.f32 %v1257_v12, %v1013_v17  ;;  %v1027_v23 = vadd.f32 %v1257_v12, %v1014_v18  ;;  %v1029_v29 = vadd.f32 %v1257_v12, %v1016_v19  ;;  %v1028_v31 = vadd.f32 %v1257_v12, %v1015_v25 }
 0x153   :  { %v1030_v26 = vmax.f32 %v1022_v20, 0.0  ;;  %v1031_v27 = vmax.f32 %v1023_v1, 0.0  ;;  %v1032_v33 = vmax.f32 %v1024_v21, 0.0  ;;  %v1033_v34 = vmax.f32 %v1025_v22, 0.0 }
 0x154   :  { %v1034_v35 = vmax.f32 %v1026_v24, 0.0  ;;  %v1035_v37 = vmax.f32 %v1027_v23, 0.0  ;;  %v1037_v36 = vmax.f32 %v1029_v29, 0.0  ;;  %v1036_v38 = vmax.f32 %v1028_v31, 0.0 }
 0x155   :  { %v1038_v28 = vpack.c.bf16 %v1031_v27, %v1030_v26  ;;  %v1039_v30 = vpack.c.bf16 %v1033_v34, %v1032_v33 }
 0x156   :  { %v1040_v32 = vpack.c.bf16 %v1035_v37, %v1034_v35  ;;  %v1041_v39 = vpack.c.bf16 %v1037_v36, %v1036_v38 }
 0x157   :  { %1396 = vmatprep.mubr.msk.bf16.mxu1 %vm937_vm2, %v1038_v28 }
 0x158   :  { %1397 = vmatmul.mubr.msk.bf16.vlgmr.msra.gmra.mxu1 %vm937_vm2, %v1039_v30 }
 0x159   :  { %1400 = vmatprep.mubr.msk.bf16.mxu1 %vm937_vm2, %v1040_v32 }
 0x160   :  { %1401 = vmatmul.mubr.msk.bf16.gmra.mxu1 %vm937_vm2, %v1041_v39 }
 0x218   :  { %v1398_v41 = vpop.f32.mrf.mxu1 }
 0x219   :  { %v1118_v42 = vadd.f32 %v1398_v41, %v1258_v40 }
 0x21a   :  { %v1109_v43 = vpop.f32.mrf.mxu1 }
 0x21b   :  { %v1267_v44 = vmul.f32 -1.442695, %v1118_v42  ;;  %v1110_v45 = vadd.f32 %v1258_v40, %v1109_v43 }
 0x21c   :  { %v1399_v46 = vpop.f32.mrf.mxu1 }
 0x21d   :  { %1445 = vpow2.f32 %v1267_v44  ;;  %v1265_v47 = vmul.f32 -1.442695, %v1110_v45  ;;  %v1121_v48 = vadd.f32 %v1399_v46, %v1258_v40 }
 0x21e   :  { %v1112_v49 = vpop.f32.mrf.mxu1 }
 0x21f   :  { %1447 = vpow2.f32 %v1265_v47  ;;  %v1268_v50 = vmul.f32 -1.442695, %v1121_v48  ;;  %v1113_v51 = vadd.f32 %v1258_v40, %v1112_v49 }
 0x220   :  { %v1402_v52 = vpop.f32.mrf.mxu1 }
 0x221   :  { %1449 = vpow2.f32 %v1268_v50  ;;  %v1266_v53 = vmul.f32 -1.442695, %v1113_v51  ;;  %v1134_v54 = vadd.f32 %v1402_v52, %v1258_v40 }
 0x222   :  { %v1125_v55 = vpop.f32.mrf.mxu1 }
 0x223   :  { %1451 = vpow2.f32 %v1266_v53  ;;  %v1271_v56 = vmul.f32 -1.442695, %v1134_v54  ;;  %v1126_v57 = vadd.f32 %v1258_v40, %v1125_v55 }
 0x224   :  { %v1403_v58 = vpop.f32.mrf.mxu1 }
 0x225   :  { %1453 = vpow2.f32 %v1271_v56  ;;  %v1269_v59 = vmul.f32 -1.442695, %v1126_v57  ;;  %v1137_v60 = vadd.f32 %v1403_v58, %v1258_v40 }
 0x226   :  { %v1128_v61 = vpop.f32.mrf.mxu1 }
 0x227   :  { %1455 = vpow2.f32 %v1269_v59  ;;  %v1272_v62 = vmul.f32 -1.442695, %v1137_v60  ;;  %v1129_v63 = vadd.f32 %v1258_v40, %v1128_v61 }
 0x229   :  { %1457 = vpow2.f32 %v1272_v62  ;;  %v1270_v0 = vmul.f32 -1.442695, %v1129_v63 }
 0x22a   :  { %v1446_v2 = vpop.eup %1445 }
 0x22b   :  { %v1166_v3 = vadd.f32 1.0, %v1446_v2  ;;  %1459 = vpow2.f32 %v1270_v0 }
 0x22c   :  { %v1448_v4 = vpop.eup %1447 }
 0x22d   :  { %1461 = vrcp.f32 %v1166_v3  ;;  %v1164_v5 = vadd.f32 1.0, %v1448_v4 }
 0x22e   :  { %v1450_v6 = vpop.eup %1449 }
 0x22f   :  { %1463 = vrcp.f32 %v1164_v5  ;;  %v1167_v7 = vadd.f32 1.0, %v1450_v6 }
 0x230   :  { %v1452_v8 = vpop.eup %1451 }
 0x231   :  { %1465 = vrcp.f32 %v1167_v7  ;;  %v1165_v9 = vadd.f32 1.0, %v1452_v8 }
 0x232   :  { %v1454_v10 = vpop.eup %1453 }
 0x233   :  { %1467 = vrcp.f32 %v1165_v9  ;;  %v1170_v11 = vadd.f32 1.0, %v1454_v10 }
 0x234   :  { %v1456_v12 = vpop.eup %1455 }
 0x235   :  { %1469 = vrcp.f32 %v1170_v11  ;;  %v1168_v13 = vadd.f32 1.0, %v1456_v12 }
 0x236   :  { %v1458_v14 = vpop.eup %1457 }
 0x237   :  { %1471 = vrcp.f32 %v1168_v13  ;;  %v1171_v15 = vadd.f32 1.0, %v1458_v14 }
 0x238   :  { %v1460_v16 = vpop.eup %1459 }
 0x239   :  { %1473 = vrcp.f32 %v1171_v15  ;;  %v1169_v17 = vadd.f32 1.0, %v1460_v16 }
 0x23a   :  { %v1462_v18 = vpop.eup %1461 }
 0x23b   :  { %1191 = vst.msk [vmem:[%s1744_s5 + $0x10] sm:$0xff] %vm1188_vm3, %v1462_v18  ;;  %1475 = vrcp.f32 %v1169_v17 }
 0x23c   :  { %v1464_v19 = vpop.eup %1463 }
 0x23d   :  { %1189 = vst.msk [vmem:[%s1744_s5] sm:$0xff] %vm1188_vm3, %v1464_v19 }
 0x23e   :  { %v1466_v20 = vpop.eup %1465 }
 0x23f   :  { %1192 = vst.msk [vmem:[%s1744_s5 + $0x18] sm:$0xff] %vm1188_vm3, %v1466_v20 }
 0x240   :  { %v1468_v1 = vpop.eup %1467 }
 0x241   :  { %1190 = vst.msk [vmem:[%s1744_s5 + $0x8] sm:$0xff] %vm1188_vm3, %v1468_v1 }
 0x242   :  { %v1470_v21 = vpop.eup %1469 }
 0x243   :  { %1195 = vst.msk [vmem:[%s1744_s5 + $0x30] sm:$0xff] %vm1188_vm3, %v1470_v21 }
 0x244   :  { %v1472_v22 = vpop.eup %1471 }
 0x245   :  { %1193 = vst.msk [vmem:[%s1744_s5 + $0x20] sm:$0xff] %vm1188_vm3, %v1472_v22 }
 0x246   :  { %v1474_v24 = vpop.eup %1473 }
 0x247   :  { %1196 = vst.msk [vmem:[%s1744_s5 + $0x38] sm:$0xff] %vm1188_vm3, %v1474_v24 }
 0x248   :  { %v1476_v23 = vpop.eup %1475 }
 0x249   :  { %1194 = vst.msk [vmem:[%s1744_s5 + $0x28] sm:$0xff] %vm1188_vm3, %v1476_v23 }

</bundles_post_ra>
